<compile_context>
chip_gen: v6e
topology: v6e:2x2x1
jax: 0.10.0
libtpu: 0.0.40
codegen_flags: <defaults>
</compile_context>

<pallas_src>
import jax
import jax.numpy as jnp
from jax.experimental import pallas as pl
from jax.experimental.pallas import tpu as pltpu

_LANE = 128


def _vmem_capacity_bytes():
    try:
        return int(pltpu.get_tpu_info().vmem_capacity_bytes)
    except Exception:
        return 64 * 1024 * 1024  # conservative: v7x per-TensorCore VMEM


def _phys_bytes_per_lane(c, itemsize):
    """Physical VMEM bytes per lane for a (c, TILE) buffer (sublane padding)."""
    return max(32, -(-(c * itemsize) // 32) * 32)


def _plan_tile(hw, c, x_itemsize, t_itemsize, vmem_cap, int_targets):
    """Largest lane-multiple spatial tile whose pipelined physical footprint fits."""
    if int_targets:
        # 2x logits buffers + 2x int-target row buffers + 1x f32 accumulator row
        per_lane = (2 * _phys_bytes_per_lane(c, x_itemsize)
                    + 2 * _phys_bytes_per_lane(1, t_itemsize)
                    + _phys_bytes_per_lane(1, 4))
    else:
        # 2x logits + 2x dense-target buffers + 2x f32 accumulator rows
        per_lane = (2 * _phys_bytes_per_lane(c, x_itemsize)
                    + 2 * _phys_bytes_per_lane(c, t_itemsize)
                    + 2 * _phys_bytes_per_lane(1, 4))
    if hw <= _LANE:
        return hw, per_lane  # full-dim block: allowed even if not a 128-multiple
    budget = min(vmem_cap // 2, 48 * 1024 * 1024)
    max_tile = max(_LANE, (budget // per_lane) // _LANE * _LANE)
    hw_floor = (hw // _LANE) * _LANE
    return min(hw_floor, max_tile), per_lane


def _compute_dtype(in_dtype):
    """bf16 math on v6e/v7x for bf16 inputs (f32 accumulation); f32 otherwise."""
    if in_dtype != jnp.bfloat16:
        return jnp.float32
    try:
        kind = jax.devices()[0].device_kind.lower()
    except Exception:
        kind = ""
    if "v5" in kind:  # v5e has no bf16 VPU/EUP
        return jnp.float32
    return jnp.bfloat16


def _make_int_target_kernel(tile, n_inner, hw, compute_dtype):
    """Targets are integer class ids; one-hot built in-kernel via iota compare."""
    needs_mask = (hw % tile) != 0

    def kernel(x_ref, t_ref, out_ref, acc_ref):
        s = pl.program_id(2)

        @pl.when(s == 0)
        def _():
            acc_ref[...] = jnp.zeros_like(acc_ref)

        x = x_ref[0].astype(compute_dtype)                 # (C, TILE) logits
        t = t_ref[0].astype(jnp.int32)                     # (1, TILE) class ids
        m = jnp.max(x, axis=0, keepdims=True)              # (1, TILE)
        e = jnp.exp(x - m)                                 # (C, TILE)
        cls = jax.lax.broadcasted_iota(jnp.int32, (x.shape[0], 1), 0)
        sel = jnp.where(cls == t, e, 0.0)                  # one-hot pick of exp(target)
        denom = jnp.sum(e, axis=0, keepdims=True, dtype=jnp.float32)
        num = jnp.sum(sel, axis=0, keepdims=True, dtype=jnp.float32)
        # per-pixel softmax probability of the target class; EUP reciprocal
        contrib = num * pl.reciprocal(denom, approx=True)
        if needs_mask:
            blk = pl.program_id(1) * n_inner + s
            pos = blk * tile + jax.lax.broadcasted_iota(jnp.int32, (1, tile), 1)
            contrib = jnp.where(pos < hw, contrib, 0.0)
        acc_ref[...] += contrib

        @pl.when(s == pl.num_programs(2) - 1)
        def _():
            inter = jnp.sum(acc_ref[...])
            out_ref[0, 0] = jnp.full((8, _LANE), inter, dtype=out_ref.dtype)

    return kernel


def _make_dense_target_kernel(tile, n_inner, hw, compute_dtype):
    """Targets are already dense float NCHW (PyTorch's targets.dim() == 4 branch)."""
    needs_mask = (hw % tile) != 0

    def kernel(x_ref, t_ref, out_ref, acc_i_ref, acc_t_ref):
        s = pl.program_id(2)

        @pl.when(s == 0)
        def _():
            acc_i_ref[...] = jnp.zeros_like(acc_i_ref)
            acc_t_ref[...] = jnp.zeros_like(acc_t_ref)

        x = x_ref[0].astype(compute_dtype)                 # (C, TILE)
        t = t_ref[0].astype(compute_dtype)                 # (C, TILE)
        m = jnp.max(x, axis=0, keepdims=True)
        e = jnp.exp(x - m)
        denom = jnp.sum(e, axis=0, keepdims=True, dtype=jnp.float32)
        num = jnp.sum(e * t, axis=0, keepdims=True, dtype=jnp.float32)
        contrib_i = num * pl.reciprocal(denom, approx=True)
        contrib_t = jnp.sum(t, axis=0, keepdims=True, dtype=jnp.float32)
        if needs_mask:
            blk = pl.program_id(1) * n_inner + s
            pos = blk * tile + jax.lax.broadcasted_iota(jnp.int32, (1, tile), 1)
            valid = pos < hw
            contrib_i = jnp.where(valid, contrib_i, 0.0)
            contrib_t = jnp.where(valid, contrib_t, 0.0)
        acc_i_ref[...] += contrib_i
        acc_t_ref[...] += contrib_t

        @pl.when(s == pl.num_programs(2) - 1)
        def _():
            inter = jnp.sum(acc_i_ref[...])
            tsum = jnp.sum(acc_t_ref[...])
            row = jax.lax.broadcasted_iota(jnp.int32, (8, _LANE), 0)
            vals = jnp.where(row == 0, inter, jnp.where(row == 1, tsum, 0.0))
            out_ref[0, 0] = vals.astype(out_ref.dtype)

    return kernel


def dice_loss(inputs, targets, num_classes, smooth=1.0):
    """Pallas TPU implementation of DiceLoss.forward (softmax / multi-class path).

    inputs:  (N, C, H, W) float logits (NCHW; f32 or bf16)
    targets: (N, H, W) integer class ids in [0, C)  OR  (N, C, H, W) dense float targets
    """
    N, C, H, W = inputs.shape
    assert C == num_classes
    if num_classes == 1:
        # TODO(synk): sigmoid path (num_classes == 1) of the PyTorch module not implemented.
        raise NotImplementedError("sigmoid DiceLoss path not implemented")

    HW = H * W
    x = inputs.reshape(N, C, HW)              # native dtype; any upcast happens in-kernel
    compute_dtype = _compute_dtype(x.dtype)
    vmem_cap = _vmem_capacity_bytes()

    int_targets = targets.ndim == 3
    if int_targets:
        if num_classes <= 127:
            t_dtype = jnp.int8
        elif num_classes <= 32767:
            t_dtype = jnp.int16
        else:
            t_dtype = jnp.int32
        t = targets.reshape(N, 1, HW).astype(t_dtype)
    else:
        t = targets.reshape(N, C, HW)

    tile, per_lane_phys = _plan_tile(
        HW, C, x.dtype.itemsize, t.dtype.itemsize, vmem_cap, int_targets)
    n_spatial = -(-HW // tile)                 # cdiv; ragged tail is masked in-kernel
    P = 2 if (n_spatial >= 2 and n_spatial % 2 == 0) else 1
    n_inner = n_spatial // P

    if int_targets:
        kernel = _make_int_target_kernel(tile, n_inner, HW, compute_dtype)
        t_spec = pl.BlockSpec((1, 1, tile), lambda b, p, s: (b, 0, p * n_inner + s))
        scratch = [pltpu.VMEM((1, tile), jnp.float32)]
    else:
        kernel = _make_dense_target_kernel(tile, n_inner, HW, compute_dtype)
        t_spec = pl.BlockSpec((1, C, tile), lambda b, p, s: (b, 0, p * n_inner + s))
        scratch = [pltpu.VMEM((1, tile), jnp.float32),
                   pltpu.VMEM((1, tile), jnp.float32)]

    out_bytes = N * P * 8 * _LANE * 4
    vmem_limit = int(min(vmem_cap,
                         max(per_lane_phys * tile + 2 * 8 * _LANE * 4 + (8 << 20),
                             32 << 20)))

    cost = pl.CostEstimate(
        flops=6 * N * C * HW,
        transcendentals=N * C * HW,
        bytes_accessed=int(x.size * x.dtype.itemsize
                           + t.size * t.dtype.itemsize + out_bytes),
    )

    out = pl.pallas_call(
        kernel,
        out_shape=jax.ShapeDtypeStruct((N, P, 8, _LANE), jnp.float32),
        grid_spec=pltpu.PrefetchScalarGridSpec(
            num_scalar_prefetch=0,
            grid=(N, P, n_inner),
            in_specs=[
                pl.BlockSpec((1, C, tile), lambda b, p, s: (b, 0, p * n_inner + s)),
                t_spec,
            ],
            out_specs=pl.BlockSpec((1, 1, 8, _LANE), lambda b, p, s: (b, p, 0, 0)),
            scratch_shapes=scratch,
        ),
        compiler_params=pltpu.CompilerParams(
            dimension_semantics=("parallel", "parallel", "arbitrary"),
            vmem_limit_bytes=vmem_limit,
        ),
        cost_estimate=cost,
    )(x, t)

    smooth = jnp.float32(smooth)
    hw_f = jnp.float32(HW)
    intersection = jnp.sum(out[:, :, 0, 0], axis=1)        # (N,) sum of P partials
    if int_targets:
        # sum(softmax) == HW and sum(one_hot) == HW exactly (labels assumed in [0, C))
        total = 2.0 * hw_f
    else:
        total = hw_f + jnp.sum(out[:, :, 1, 0], axis=1)    # sum(softmax) + sum(targets)
    dice = (2.0 * intersection + smooth) / (total + smooth)
    return 1.0 - jnp.mean(dice)


def _reference_dice_loss(inputs, targets, num_classes, smooth=1.0):
    """Pure-JAX mirror of the PyTorch module, for correctness checks."""
    p = jax.nn.softmax(inputs.astype(jnp.float32), axis=1)
    if targets.ndim == 3:
        t = jax.nn.one_hot(targets.astype(jnp.int32), num_classes, dtype=jnp.float32)
        t = jnp.transpose(t, (0, 3, 1, 2))
    else:
        t = targets.astype(jnp.float32)
    inter = jnp.sum(p * t, axis=(1, 2, 3))
    total = jnp.sum(p, axis=(1, 2, 3)) + jnp.sum(t, axis=(1, 2, 3))
    dice = (2.0 * inter + smooth) / (total + smooth)
    return 1.0 - jnp.mean(dice)


if __name__ == "__main__":
    num_classes = 4
    key = jax.random.PRNGKey(0)
    k1, k2, k3, k4, k5 = jax.random.split(key, 5)

    # 1) integer class-id targets, HW a multiple of the tile (no tail mask)
    inputs = jax.random.normal(k1, (2, num_classes, 16, 16), dtype=jnp.float32)
    tgt_int = jax.random.randint(k2, (2, 16, 16), 0, num_classes, dtype=jnp.int32)
    loss1 = jax.block_until_ready(dice_loss(inputs, tgt_int, num_classes, smooth=1.0))
    ref1 = _reference_dice_loss(inputs, tgt_int, num_classes, smooth=1.0)
    assert jnp.abs(loss1 - ref1) < 1e-3, (loss1, ref1)   # approx reciprocal tolerance

    # 2) integer targets with HW not a multiple of 128 (in-kernel tail mask + P split)
    inputs2 = jax.random.normal(k3, (2, num_classes, 20, 20), dtype=jnp.float32)
    tgt_int2 = jax.random.randint(k4, (2, 20, 20), 0, num_classes, dtype=jnp.int32)
    loss2 = jax.block_until_ready(dice_loss(inputs2, tgt_int2, num_classes, smooth=1.0))
    ref2 = _reference_dice_loss(inputs2, tgt_int2, num_classes, smooth=1.0)
    assert jnp.abs(loss2 - ref2) < 1e-3, (loss2, ref2)

    # 3) dense float targets (PyTorch targets.dim() == 4 branch)
    tgt_dense = jax.random.uniform(k5, (2, num_classes, 16, 16), dtype=jnp.float32)
    loss3 = jax.block_until_ready(dice_loss(inputs, tgt_dense, num_classes, smooth=1.0))
    ref3 = _reference_dice_loss(inputs, tgt_dense, num_classes, smooth=1.0)
    assert jnp.abs(loss3 - ref3) < 1e-3, (loss3, ref3)

    print("KERNEL_OK")
</pallas_src>

<mosaic_0001>
module attributes {stable_mosaic.version = 11 : i64} {
  func.func @kernel(%arg0: i32, %arg1: i32, %arg2: i32, %arg3: memref<1x4x256xf32, #tpu.memory_space<vmem>>, %arg4: memref<1x1x256xi8, #tpu.memory_space<vmem>>, %arg5: memref<1x1x8x128xf32, #tpu.memory_space<vmem>>, %arg6: memref<1x256xf32, #tpu.memory_space<vmem>>) attributes {dimension_semantics = [#tpu.dimension_semantics<parallel>, #tpu.dimension_semantics<parallel>, #tpu.dimension_semantics<arbitrary>], iteration_bounds = array<i64: 2, 1, 1>, scalar_prefetch = 0 : i64, scratch_operands = 1 : i64, tpu.core_type = #tpu.core_type<tc>, window_params = [{transform_indices = @transform_0, window_bounds = array<i64: 1, 4, 256>}, {transform_indices = @transform_1, window_bounds = array<i64: 1, 1, 256>}, {transform_indices = @transform_2, window_bounds = array<i64: 1, 1, 8, 128>}]} {
    %c0_i32 = arith.constant 0 : i32
    %0 = arith.cmpi eq, %arg2, %c0_i32 : i32
    %1 = arith.extui %0 : i1 to i32
    %c0_i32_0 = arith.constant 0 : i32
    %2 = arith.cmpi ne, %1, %c0_i32_0 : i32
    scf.if %2 {
      %cst_15 = arith.constant 0.000000e+00 : f32
      %31 = vector.broadcast %cst_15 : f32 to vector<1x256xf32>
      %c0_16 = arith.constant 0 : index
      %c0_17 = arith.constant 0 : index
      %32 = vector.load %arg6[%c0_16, %c0_17] : memref<1x256xf32, #tpu.memory_space<vmem>>, vector<1x256xf32>
      tpu.vector_store %arg6[%c0_16, %c0_17], %31 {strides = array<i32>} : memref<1x256xf32, #tpu.memory_space<vmem>>, vector<1x256xf32>,
    } else {
    }
    %c0 = arith.constant 0 : index
    %c0_1 = arith.constant 0 : index
    %c0_2 = arith.constant 0 : index
    %3 = vector.load %arg3[%c0, %c0_1, %c0_2] : memref<1x4x256xf32, #tpu.memory_space<vmem>>, vector<1x4x256xf32>
    %4 = vector.shape_cast %3 : vector<1x4x256xf32> to vector<4x256xf32>
    %c0_3 = arith.constant 0 : index
    %c0_4 = arith.constant 0 : index
    %c0_5 = arith.constant 0 : index
    %5 = vector.load %arg4[%c0_3, %c0_4, %c0_5] : memref<1x1x256xi8, #tpu.memory_space<vmem>>, vector<1x1x256xi8>
    %6 = vector.shape_cast %5 : vector<1x1x256xi8> to vector<1x256xi8>
    %7 = arith.extsi %6 : vector<1x256xi8> to vector<1x256xi32>
    %cst = arith.constant dense<0xFF800000> : vector<256xf32>
    %8 = vector.multi_reduction <maximumf>, %4, %cst [0] : vector<4x256xf32> to vector<256xf32>
    %9 = vector.shape_cast %8 : vector<256xf32> to vector<1x256xf32>
    %10 = vector.broadcast %9 : vector<1x256xf32> to vector<4x256xf32>
    %11 = arith.subf %4, %10 : vector<4x256xf32>
    %12 = math.exp %11 : vector<4x256xf32>
    %13 = tpu.iota {dimensions = array<i32: 0>} : vector<4x1xi32>
    %14 = vector.broadcast %13 : vector<4x1xi32> to vector<4x256xi32>
    %15 = vector.broadcast %7 : vector<1x256xi32> to vector<4x256xi32>
    %16 = arith.cmpi eq, %14, %15 : vector<4x256xi32>
    %cst_6 = arith.constant 0.000000e+00 : f32
    %17 = vector.broadcast %cst_6 : f32 to vector<4x256xf32>
    %18 = arith.select %16, %12, %17 : vector<4x256xi1>, vector<4x256xf32>
    %cst_7 = arith.constant dense<0.000000e+00> : vector<256xf32>
    %19 = vector.multi_reduction <add>, %12, %cst_7 [0] : vector<4x256xf32> to vector<256xf32>
    %20 = vector.shape_cast %19 : vector<256xf32> to vector<1x256xf32>
    %cst_8 = arith.constant dense<0.000000e+00> : vector<256xf32>
    %21 = vector.multi_reduction <add>, %18, %cst_8 [0] : vector<4x256xf32> to vector<256xf32>
    %22 = vector.shape_cast %21 : vector<256xf32> to vector<1x256xf32>
    %23 = tpu.reciprocal %20 {approx = true} : vector<1x256xf32> -> vector<1x256xf32>
    %24 = arith.mulf %22, %23 : vector<1x256xf32>
    %c0_9 = arith.constant 0 : index
    %c0_10 = arith.constant 0 : index
    %25 = vector.load %arg6[%c0_9, %c0_10] : memref<1x256xf32, #tpu.memory_space<vmem>>, vector<1x256xf32>
    %26 = arith.addf %25, %24 : vector<1x256xf32>
    %c0_11 = arith.constant 0 : index
    %c0_12 = arith.constant 0 : index
    %27 = vector.load %arg6[%c0_11, %c0_12] : memref<1x256xf32, #tpu.memory_space<vmem>>, vector<1x256xf32>
    tpu.vector_store %arg6[%c0_11, %c0_12], %26 {strides = array<i32>} : memref<1x256xf32, #tpu.memory_space<vmem>>, vector<1x256xf32>,
    %c0_i32_13 = arith.constant 0 : i32
    %28 = arith.cmpi eq, %arg2, %c0_i32_13 : i32
    %29 = arith.extui %28 : i1 to i32
    %c0_i32_14 = arith.constant 0 : i32
    %30 = arith.cmpi ne, %29, %c0_i32_14 : i32
    scf.if %30 {
      %c0_15 = arith.constant 0 : index
      %c0_16 = arith.constant 0 : index
      %31 = vector.load %arg6[%c0_15, %c0_16] : memref<1x256xf32, #tpu.memory_space<vmem>>, vector<1x256xf32>
      %32 = vector.shape_cast %31 : vector<1x256xf32> to vector<1x1x256xf32>
      %cst_17 = arith.constant dense<0.000000e+00> : vector<1xf32>
      %33 = vector.multi_reduction <add>, %32, %cst_17 [1, 2] : vector<1x1x256xf32> to vector<1xf32>
      %34 = vector.shape_cast %33 : vector<1xf32> to vector<1x1x1xf32>
      %35 = vector.extract %34[0, 0, 0] : f32 from vector<1x1x1xf32>
      %36 = vector.broadcast %35 : f32 to vector<8x128xf32>
      %c0_18 = arith.constant 0 : index
      %c0_19 = arith.constant 0 : index
      %c0_20 = arith.constant 0 : index
      %c0_21 = arith.constant 0 : index
      %37 = vector.load %arg5[%c0_18, %c0_19, %c0_20, %c0_21] : memref<1x1x8x128xf32, #tpu.memory_space<vmem>>, vector<1x1x8x128xf32>
      %38 = vector.shape_cast %37 : vector<1x1x8x128xf32> to vector<8x128xf32>
      %39 = vector.shape_cast %36 : vector<8x128xf32> to vector<1x1x8x128xf32>
      tpu.vector_store %arg5[%c0_18, %c0_19, %c0_20, %c0_21], %39 {strides = array<i32>} : memref<1x1x8x128xf32, #tpu.memory_space<vmem>>, vector<1x1x8x128xf32>,
    } else {
    }
    return
  }
  func.func @transform_0(%arg0: i32, %arg1: i32, %arg2: i32) -> (i32, i32, i32) {
    %c1_i32 = arith.constant 1 : i32
    %0 = arith.muli %arg1, %c1_i32 : i32
    %1 = arith.addi %0, %arg2 : i32
    %c0_i32 = arith.constant 0 : i32
    %c0_i32_0 = arith.constant 0 : i32
    return %arg0, %c0_i32, %1 : i32, i32, i32
  }
  func.func @transform_1(%arg0: i32, %arg1: i32, %arg2: i32) -> (i32, i32, i32) {
    %c1_i32 = arith.constant 1 : i32
    %0 = arith.muli %arg1, %c1_i32 : i32
    %1 = arith.addi %0, %arg2 : i32
    %c0_i32 = arith.constant 0 : i32
    %c0_i32_0 = arith.constant 0 : i32
    return %arg0, %c0_i32, %1 : i32, i32, i32
  }
  func.func @transform_2(%arg0: i32, %arg1: i32, %arg2: i32) -> (i32, i32, i32, i32) {
    %c0_i32 = arith.constant 0 : i32
    %c0_i32_0 = arith.constant 0 : i32
    %c0_i32_1 = arith.constant 0 : i32
    return %arg0, %arg1, %c0_i32, %c0_i32_0 : i32, i32, i32, i32
  }
}

</mosaic_0001>

<bundles_post_ra>
// kernel: tpu_custom_call.1
= control target key start
LH: loop header
LB: loop body
LE: loop exit
PB: predicated region body
PF: predicated region fallthrough
CT: control target
= control target key end

     0   :  { %7 = vsyncpa [#allocation4], 0  ;;  %s890_s0 = inlined_call_operand.hbm [shape: f32[2,4,256], index: 0, kind: input, shape index: {}]   ;;  %s891_s1 = inlined_call_operand.vmem [shape: s8[2,1,256], index: 1, kind: input, shape index: {}]   ;;  %s892_s2 = inlined_call_operand.hbm [shape: f32[2,1,8,128], index: 2, kind: output, shape index: {}]  }
   0x1   :  { %9 = vsyncpa [#allocation4 + $0x1], 0 }
   0x2   :  { %10 = vsyncpa [#allocation5], 0 }
   0x3   :  { %12 = vsyncpa [#allocation5 + $0x1], 0  ;;  %s713_s9 = smov 0   ;;  %s715_s10 = smov 0  }
   0x4   :  { %s717_s11 = smov 0   ;;  %s719_s12 = smov 0  }
   0x5   :  { %s721_s13 = smov 0   ;;  %s723_s14 = smov 0  }
   0x6 LB: > { %s495_s15 = sadd.s32 4294967295, %s692_s14   ;;  %s496_s16 = sadd.s32 4294967294, %s692_s14   ;;  %s692_s14 = sphi %s723_s14, %s18_s14   ;;  %s688_s13 = sphi %s721_s13, %s906_s13   ;;  %s684_s12 = sphi %s719_s12, %s905_s12   ;;  %s680_s11 = sphi %s717_s11, %s904_s11   ;;  %s676_s10 = sphi %s715_s10, %s903_s10   ;;  %s672_s9 = sphi %s713_s9, %s902_s9  }
   0x7   : > { %s37_s17 = sadd.s32 1, %s688_s13  ;;  %s48_s18 = sadd.s32 1, %s680_s11 }
   0x8   : > { %p39_p0 = scmp.ge.s32.totalorder %s37_s17, 2  ;;  %p55_p1 = scmp.ne.s32.totalorder %s680_s11, %s676_s10 }
   0x9   : > { %p56_p2 = scmp.eq.s32.totalorder %s692_s14, 0  ;;  %p61_p3 = scmp.ne.s32.totalorder %s676_s10, %s672_s9 }
   0xa   : > { %s908_s17 = smov (%p39_p0, %s37_s17), 0  ;;  %p62_p5 = scmp.eq.s32.totalorder %s495_s15, 0 }
   0xb   : > { %p754_p4 = por %p56_p2, %p55_p1  ;;  %s43_s20 = ssub.s32 %s688_s13, %s908_s17 }
   0xc   : > { %p117_p6 = scmp.eq.s32.totalorder %s495_s15, 1  ;;  %p46_p7 = scmp.eq.s32.totalorder %s43_s20, 0 }
   0xd   : > { %p760_p8 = por %p62_p5, %p61_p3  ;;  %p123_p10 = scmp.eq.s32.totalorder %s496_s16, 1 }
   0xe   : > { %p764_p9 = por %p117_p6, %p55_p1  ;;  %p525_p13 = scmp.lt.s32.totalorder %s692_s14, 2 }
   0xf   : > { %s769_s23 = scalar_select %p46_p7, %s680_s11, %s48_s18  }
  0x10   : > { %p771_p11 = por %p123_p10, %p61_p3  ;;  %s143_s25 = sand.u32 1, %s680_s11  }
  0x11   : > { %s499_s26 = sshll.u32 %s143_s25, 3  ;;  %s510_s27 = sshll.u32 %s688_s13, 7 }
  0x12   : > { %s896_s24 = scalar_select %p771_p11, 1, 0 }
  0x13   : > { %s156_s30 = scalar_lea.hbm %s890_s0, %s510_s27  ;;  %s147_s3 = scalar_lea.vmem [#allocation3], %s499_s26 }
  0x14   : > { %s158_s4 = sshll.u32 %s147_s3, 4  ;;  %p784_p0 = pnand %p525_p13, %p754_p4  ;;  %s159_s4 = int_to_ptr.vmem [resolvable:$true] %s158_s4 }
  0x15   : > { %p502_p1 = scmp.ge.s32.totalorder %s692_s14, 1  ;;  %p177_p2 = scmp.lt.s32.totalorder %s692_s14, 3 }
  0x16   : > { %s144_s6 = scalar_lea.sflag [#allocation4], %s143_s25  ;;  %p586_p3 = pneg %p784_p0 }
  0x17   : > { %s597_s7 = scalar_lea.vmem %s159_s4, 128  ;;  %s694_s8 = smov [#allocation3]  }
  0x18   : > { %p598_p5 = scmp.ne.s32.totalorder %s159_s4, %s597_s7  ;;  %s602_s15 = sshll.u32 %s694_s8, 4  ;;  %s603_s15 = int_to_ptr.vmem [resolvable:$false] %s602_s15 }
  0x19   : > { %s604_s16 = scalar_lea.vmem %s603_s15, 256  ;;  %p605_p10 = scmp.lt.s32.totalorder %s159_s4, %s603_s15 }
  0x1a   : > { %p600_p6 = pnand %p598_p5, %p586_p3  ;;  %p606_p12 = scmp.lt.s32.totalorder %s604_s16, %s597_s7 }
  0x1c   : > { %p601_p7 = pneg %p600_p6  ;;  %p607_p4 = por %p606_p12, %p605_p10 }
  0x1e   : > { %p608_p13 = pnand %p607_p4, %p601_p7 }
  0x20   : > { %611 = shalt.err (!%p608_p13)
}
  0x21   : > { %520 = dma.hbm_to_vmem [thread:$0]  (!%p784_p0), %s156_s30, 128, %s159_s4, %s144_s6  }
  0x22   : > { %p178_p11 = pnand %p502_p1, %p177_p2 }
  0x23   : > { %s799_s18 = sand.u32 (!%p178_p11), 1, %s676_s10  }
  0x24   : > { %181 = sbr.rel (%p178_p11) target bundleno = 344 (0x158), region = 28  ;;  %s503_s19 = sshll.u32 (!%p178_p11), %s799_s18, 3 }
  0x25   : > { %s184_s20 = scalar_lea.sflag (!%p178_p11), [#allocation4], %s799_s18  ;;  %s187_s25 = scalar_lea.vmem (!%p178_p11), [#allocation3], %s503_s19 }
  0x29   : > { %663 = dma.done.wait (%p760_p8), %s184_s20, 128  }
  0x2a   : > { %665 = vsyncadd (%p760_p8), %s184_s20, 4294967168  ;;  %v234_v0 = vlaneseq  ;;  %v695_v2 = vmov 0.0   ;;  %vm245_vm1 = vcmask 1043456   ;;  %v239_v3 = vld [vmem:[%s187_s25] sm:$0xff]  ;;  %p221_p8 = scmp.lt.s32.totalorder %s684_s12, 1  ;;  %vm364_vm4 = vcmask 1040384  }
  0x2b   : > { %v243_v4 = vcombine.high %v239_v3, %v239_v3  ;;  %v246_v5 = vsel %vm245_vm1, %v239_v3, -inf  ;;  %v696_v61 = vmov 1966171168   ;;  %s216_s30 = scalar_lea.vmem [#allocation6], %s503_s19  ;;  %s507_s4 = sshll.u32 %s684_s12, 7 }
  0x2c   : > { %vm809_vm0 = vcmp.lt.s32.totalorder %v234_v0, 256  ;;  %v247_v6 = vrot.slane %v246_v5, 4  ;;  %s222_s21 = scalar_select %p221_p8, %s684_s12, 1  ;;  %v822_v20 = vshrl.u32 %v234_v0, 7  ;;  %v329_v62 = vunpack.c.l.s4 %v696_v61 }
  0x2d   : > { %238 = vst.msk [vmem:[#allocation2] sm:$0x3] %vm809_vm0, %v695_v2  ;;  %v253_v7 = vsel %vm245_vm1, %v243_v4, -inf  ;;  %s394_s3 = sshll.u32 %s216_s30, 4  ;;  %s392_s8 = scalar_lea.hbm %s892_s2, %s507_s4  ;;  %s845_s3 = int_to_ptr.vmem [resolvable:$true] %s394_s3 }
  0x2e   : > { %v248_v8 = vmax.f32 %v246_v5, %v247_v6  ;;  %v254_v9 = vrot.slane %v253_v7, 4  ;;  %s505_s26 = sshll.u32 %s222_s21, 1  ;;  %v825_v25 = vsub.s32 0, %v822_v20  ;;  %v275_v26 = vsub.s32 4, %v822_v20  ;;  %s380_s15 = scalar_lea.sflag [#allocation5], %s799_s18 }
  0x2f   : > { %s227_s29 = scalar_lea.vmem %s891_s1, %s505_s26  ;;  %v330_v2 = vunpack.c.0.s8 %v329_v62  ;;  %s612_s16 = scalar_lea.vmem %s845_s3, 128 }
  0x30   : > { %v249_v10 = vrot.slane %v248_v8, 2  ;;  %v255_v11 = vmax.f32 %v253_v7, %v254_v9  ;;  %v240_v21 = vld [vmem:[%s227_s29] sm:$0x3]  ;;  %p613_p11 = scmp.ne.s32.totalorder %s845_s3, %s612_s16  ;;  %s697_s19 = smov [#allocation6]  }
  0x31   : > { %v241_v24 = vunpack.c.0.s8 %v240_v21  ;;  %v333_v7 = vsub.s32 %v330_v2, %v822_v20  ;;  %s616_s12 = sshll.u32 %s697_s19, 4  ;;  %s617_s12 = int_to_ptr.vmem [resolvable:$false] %s616_s12 }
  0x32   : > { %v250_v12 = vmax.f32 %v248_v8, %v249_v10  ;;  %v256_v13 = vrot.slane %v255_v11, 2  ;;  %p614_p12 = pnand %p613_p11, %p764_p9  ;;  %s618_s20 = scalar_lea.vmem %s617_s12, 256 }
  0x33   : > { %v272_v27 = vrot.slane %v241_v24, %v825_v25  ;;  %v276_v28 = vrot.slane %v241_v24, %v275_v26  ;;  %p619_p1 = scmp.lt.s32.totalorder %s845_s3, %s617_s12  ;;  %p620_p2 = scmp.lt.s32.totalorder %s618_s20, %s612_s16 }
  0x34   : > { %v251_v14 = vrot.slane %v250_v12, 1  ;;  %v257_v15 = vmax.f32 %v255_v11, %v256_v13  ;;  %v324_v10 = vld [vmem:[#allocation2] sm:$0x3]  ;;  %v360_v13 = vsub.s32 1, %v822_v20  ;;  %p615_p0 = pneg %p614_p12 }
  0x35   : > { %v280_v29 = vrot.slane %v272_v27, %v825_v25  ;;  %v284_v30 = vrot.slane %v276_v28, %v825_v25  ;;  %p621_p3 = por %p620_p2, %p619_p1 }
  0x36   : > { %v252_v16 = vmax.f32 %v250_v12, %v251_v14  ;;  %v258_v17 = vrot.slane %v257_v15, 1 }
  0x37   : > { %vm285_vm2 = vcmp.eq.s32.totalorder %v822_v20, %v280_v29  ;;  %vm286_vm3 = vcmp.eq.s32.totalorder %v822_v20, %v284_v30  ;;  %p622_p5 = pnand %p621_p3, %p615_p0 }
  0x38   : > { %v259_v18 = vmax.f32 %v257_v15, %v258_v17 }
  0x3a   : > { %v262_v19 = vcombine.low %v252_v16, %v259_v18 }
  0x3c   : > { %v264_v22 = vsub.f32 %v239_v3, %v262_v19 }
  0x3e   : > { %v265_v23 = vmul.f32 1.442695, %v264_v22 }
  0x40   : > { %578 = vpow2.f32 %v265_v23 }
  0x4d   : > { %v579_v31 = vpop.eup %578 }
  0x4e   : > { %v288_v32 = vcombine.high %v579_v31, %v579_v31  ;;  %v290_v33 = vsel %vm285_vm2, %v579_v31, 0.0  ;;  %v292_v34 = vsel %vm245_vm1, %v579_v31, 0.0 }
  0x4f   : > { %v293_v35 = vrot.slane %v292_v34, 4  ;;  %v306_v36 = vsel %vm245_vm1, %v290_v33, 0.0 }
  0x50   : > { %v291_v37 = vsel %vm286_vm3, %v288_v32, 0.0  ;;  %v299_v38 = vsel %vm245_vm1, %v288_v32, 0.0  ;;  %v307_v41 = vrot.slane %v306_v36, 4 }
  0x51   : > { %v294_v39 = vadd.f32 %v293_v35, %v292_v34  ;;  %v300_v40 = vrot.slane %v299_v38, 4  ;;  %v313_v42 = vsel %vm245_vm1, %v291_v37, 0.0 }
  0x52   : > { %v314_v45 = vrot.slane %v313_v42, 4  ;;  %v308_v48 = vadd.f32 %v307_v41, %v306_v36 }
  0x53   : > { %v295_v43 = vrot.slane %v294_v39, 2  ;;  %v301_v44 = vadd.f32 %v300_v40, %v299_v38 }
  0x54   : > { %v315_v51 = vadd.f32 %v314_v45, %v313_v42  ;;  %v309_v54 = vrot.slane %v308_v48, 2 }
  0x55   : > { %v296_v46 = vadd.f32 %v295_v43, %v294_v39  ;;  %v302_v47 = vrot.slane %v301_v44, 2 }
  0x56   : > { %v316_v56 = vrot.slane %v315_v51, 2  ;;  %v310_v57 = vadd.f32 %v309_v54, %v308_v48 }
  0x57   : > { %v297_v49 = vrot.slane %v296_v46, 1  ;;  %v303_v50 = vadd.f32 %v302_v47, %v301_v44 }
  0x58   : > { %v317_v58 = vadd.f32 %v316_v56, %v315_v51  ;;  %v311_v59 = vrot.slane %v310_v57, 1 }
  0x59   : > { %v298_v52 = vadd.f32 %v297_v49, %v296_v46  ;;  %v304_v53 = vrot.slane %v303_v50, 1 }
  0x5a   : > { %v318_v60 = vrot.slane %v317_v58, 1  ;;  %v312_v63 = vadd.f32 %v311_v59, %v310_v57 }
  0x5b   : > { %v305_v55 = vadd.f32 %v304_v53, %v303_v50  ;;  %580 = vrcp.f32 %v298_v52 }
  0x5c   : > { %v319_v0 = vadd.f32 %v318_v60, %v317_v58 }
  0x5d   : > { %582 = vrcp.f32 %v305_v55 }
  0x68   : > { %v581_v3 = vpop.eup %580 }
  0x69   : > { %v322_v4 = vmul.f32 %v581_v3, %v312_v63 }
  0x6a   : > { %v583_v5 = vpop.eup %582 }
  0x6b   : > { %v323_v6 = vmul.f32 %v583_v5, %v319_v0 }
  0x6d   : > { %v327_v8 = vcombine.low %v322_v4, %v323_v6 }
  0x6f   : > { %v334_v9 = vrot.slane %v327_v8, %v333_v7 }
  0x71   : > { %v341_v11 = vrot.slane %v334_v9, %v333_v7 }
  0x73   : > { %v343_v12 = vadd.f32 %v341_v11, %v324_v10 }
  0x75   : > { %348 = vst.msk [vmem:[#allocation2] sm:$0x3] %vm809_vm0, %v343_v12 }
  0x7c   : > { %v352_v14 = vld [vmem:[#allocation2] sm:$0x3] }
  0x7d   : > { %v357_v15 = vrot.slane %v352_v14, %v825_v25  ;;  %v361_v16 = vrot.slane %v352_v14, %v360_v13 }
  0x7f   : > { %v365_v17 = vsel %vm364_vm4, %v357_v15, 0.0  ;;  %v366_v18 = vsel %vm364_vm4, %v361_v16, 0.0 }
  0x80   : > { %v367_v19 = vadd.f32 %v366_v18, %v365_v17 }
  0x82   : > { %368 = vadd.xlane.f32.xlu0 %v367_v19 }
 0x10b   : > { %v369_v21 = vpop.xlane.xlu0 %368 }
 0x10c   : > { %v370_v22 = vrot.slane %v369_v21, 4 }
 0x10e   : > { %v371_v23 = vadd.f32 %v370_v22, %v369_v21 }
 0x110   : > { %v372_v24 = vrot.slane %v371_v23, 2 }
 0x112   : > { %v373_v1 = vadd.f32 %v372_v24, %v371_v23 }
 0x114   : > { %v374_v26 = vrot.slane %v373_v1, 1 }
 0x116   : > { %v375_v20 = vadd.f32 %v374_v26, %v373_v1 }
 0x118   : > { %511 = vpush %v375_v20 }
 0x149   : > { %s512_s5 = spop %511 }
 0x14a   : > { %v377_v25 = vstv %s512_s5 }
 0x14b   : > { %378 = vst [vmem:[%s216_s30] sm:$0xff] %v377_v25 }
 0x14c   : > { %625 = shalt.err (!%p622_p5)
}
 0x14d   : > { %s626_s25 = scalar_lea.hbm %s392_s8, 128  ;;  %s630_s26 = scalar_lea.hbm %s892_s2, 256 }
 0x14e   : > { %p627_p6 = scmp.ne.s32.totalorder %s392_s8, %s626_s25  ;;  %p631_p4 = scmp.lt.s32.totalorder %s392_s8, %s892_s2 }
 0x14f   : > { %p632_p13 = scmp.lt.s32.totalorder %s630_s26, %s626_s25 }
 0x150   : > { %p628_p7 = pnand %p627_p6, %p764_p9 }
 0x151   : > { %p633_p8 = por %p632_p13, %p631_p4 }
 0x152   : > { %p629_p10 = pneg %p628_p7 }
 0x154   : > { %p634_p11 = pnand %p633_p8, %p629_p10 }
 0x156   : > { %637 = shalt.err (!%p634_p11)
}
 0x157   : > { %515 = dma.vmem_to_hbm [thread:$0]  (%p764_p9), %s845_s3, 128, %s392_s8, %s380_s15  }
 0x158 PF: > { %s406_s29 = sand.u32 1, %s672_s9   ;;  %p900_p12 = scmp.ne.s32.totalorder %s896_s24, 0 }
 0x159   : > { %p901_p0 = scmp.ge.s32.totalorder %s692_s14, 2  ;;  %s407_s30 = scalar_lea.sflag [#allocation5], %s406_s29 }
 0x15b   : > { %p522_p1 = pnand %p901_p0, %p900_p12 }
 0x15d   : > { %p523_p2 = pneg %p522_p1 }
 0x15f   : > { %667 = dma.done.wait (%p523_p2), %s407_s30, 128  }
 0x160   : > { %669 = vsyncadd (%p523_p2), %s407_s30, 4294967168  ;;  %s18_s14 = sadd.s32 1, %s692_s14   ;;  %s902_s9 = smov %s676_s10 }
 0x161   : > { %p15_p3 = scmp.ge.s32.totalorder %s18_s14, 4   ;;  %s903_s10 = smov %s680_s11 }
 0x162   : > { %s904_s11 = smov %s769_s23  ;;  %s905_s12 = smov %s688_s13 }
 0x163   : > { %s906_s13 = smov %s908_s17  ;;  %17 = sbr.rel (!%p15_p3) target bundleno = 6 (0x6), region = 84 }
 0x168   :  { %412 = vsyncpa [#allocation4], 1 }
 0x169   :  { %414 = vsyncpa [#allocation4 + $0x1], 1 }
 0x16a   :  { %415 = vsyncpa [#allocation5], 1 }
 0x16b   :  { %417 = vsyncpa [#allocation5 + $0x1], 1 }

</bundles_post_ra>
